<compile_context>
chip_gen: v7x
topology: tpu7x:2x2x1
jax: 0.10.0
libtpu: 0.0.40
codegen_flags: <defaults>
</compile_context>

<pallas_src>
import functools

import jax
import jax.numpy as jnp
from jax.experimental import pallas as pl
from jax.experimental.pallas import tpu as pltpu

_LANE = 128      # lane width (last dim)
_SUBLANE = 8     # sublane width (second-to-last dim)

# Activations with act(0) == 0: zero-padded feature columns stay exactly zero
# layer-to-layer, so padding is self-consistent.
_ZERO_PRESERVING_ACTS = ("tanh", "relu", "identity")


def _round_up(n, m):
    return ((n + m - 1) // m) * m


def _apply_act(x, act_name):
    if act_name == "tanh":
        return jnp.tanh(x)           # EUP
    if act_name == "relu":
        return jnp.maximum(x, 0.0)   # VPU
    if act_name == "identity":
        return x
    raise ValueError(f"unsupported activation: {act_name}")


def _fused_mlp_kernel(*refs, n_layers, act, act_output):
    """Whole MLP on one (B, features) tile.

    refs = (x_ref, w1_ref, b1_ref, ..., wL_ref, bL_ref, o_ref).
    All layers run back-to-back in vregs; exactly one VMEM store at the end.
    """
    x_ref = refs[0]
    o_ref = refs[-1]
    p_refs = refs[1:-1]

    x = x_ref[...]
    for ln in range(n_layers):
        w = p_refs[2 * ln][...]
        b = p_refs[2 * ln + 1][...]
        # MXU matmul with f32 accumulation; bias add + activation stay f32
        # (v5e has no bf16 VPU/EUP).  Padded rows/cols contribute exactly 0.
        y = jnp.dot(x, w, preferred_element_type=jnp.float32) + b
        x = _apply_act(y, act if ln < n_layers - 1 else act_output)
    o_ref[...] = x.astype(o_ref.dtype)


def make_params(key, input_size, output_size, hidden_sizes):
    """Deterministic init mirroring the layer shapes of the PyTorch module.

    Weights stored as [in, out] (transpose of PyTorch's [out, in]).
    """
    sizes = [input_size] + list(hidden_sizes) + [output_size]
    params = []
    for ln in range(len(sizes) - 1):
        fan_in, fan_out = sizes[ln], sizes[ln + 1]
        key, kw, kb = jax.random.split(key, 3)
        bound = 1.0 / float(fan_in) ** 0.5
        w = jax.random.uniform(kw, (fan_in, fan_out), jnp.float32, -bound, bound)
        b = jax.random.uniform(kb, (1, fan_out), jnp.float32, -bound, bound)
        params.append((w, b))
    return params


def pad_params(params, act):
    """One-time zero-padding of parameter feature dims (never per call).

    Interior feature dims are only sublane-aligned (multiple of 8); only the
    last layer's output dim is lane-padded to 128 so the final store is
    lane-dense.  Layer 0 keeps its true input dim, so the raw (B, din)
    activations enter the kernel with no wrapper-side padding.  Zero padding
    is exact because act(0) == 0 for the supported hidden activations.
    """
    assert act in _ZERO_PRESERVING_ACTS, (
        "zero-padded interior feature dims require act(0) == 0")
    n = len(params)
    padded = []
    in_dim = params[0][0].shape[0]          # layer-0 contraction dim: unpadded
    for ln, (w, b) in enumerate(params):
        din, dout = w.shape
        last = ln == n - 1
        dout_p = _round_up(dout, _LANE if last else _SUBLANE)
        w_p = jnp.zeros((in_dim, dout_p), jnp.float32).at[:din, :dout].set(w)
        b_p = jnp.zeros((1, dout_p), jnp.float32).at[:, :dout].set(b)
        padded.append((w_p, b_p))
        in_dim = dout_p
    return padded


def _cost_estimate(padded_params, steps, batch, act):
    flops = 0
    transcendentals = 0
    bytes_accessed = 0
    for ln, (w, b) in enumerate(padded_params):
        din, dout = w.shape
        flops += 2 * steps * batch * din * dout
        bytes_accessed += (w.size + b.size) * 4
        if ln < len(padded_params) - 1 and act == "tanh":
            transcendentals += steps * batch * dout
    din0 = padded_params[0][0].shape[0]
    dout_p = padded_params[-1][0].shape[1]
    bytes_accessed += steps * batch * (din0 + dout_p) * 4
    return pl.CostEstimate(flops=int(flops),
                           transcendentals=int(transcendentals),
                           bytes_accessed=int(bytes_accessed))


_COMPILER_PARAMS = pltpu.CompilerParams(vmem_limit_bytes=32 * 1024 * 1024)
# TODO(synk): add a K/N-tiled grid fallback (accumulator scratch, "arbitrary"
# K axis) for hidden sizes large enough to stress v7x's 64 MiB VMEM.


def rnn_mlp_wrapper_forward(input_, state, padded_params, output_size,
                            act="tanh", act_output="identity"):
    """RNN_MLP_wrapper.forward: one fused MLP pass on input_, state untouched."""
    B, _ = input_.shape
    dout_p = padded_params[-1][0].shape[1]
    flat = [p for wb in padded_params for p in wb]

    kernel = functools.partial(_fused_mlp_kernel, n_layers=len(padded_params),
                               act=act, act_output=act_output)
    vmem = pl.BlockSpec(memory_space=pltpu.MemorySpace.VMEM)

    out_pad = pl.pallas_call(
        kernel,
        out_shape=jax.ShapeDtypeStruct((B, dout_p), jnp.float32),
        in_specs=[vmem] * (1 + len(flat)),
        out_specs=vmem,
        compiler_params=_COMPILER_PARAMS,
        cost_estimate=_cost_estimate(padded_params, 1, B, act),
    )(input_, *flat)

    # Output is stored lane-dense (128-wide); one slice recovers the true width.
    return out_pad[:, :output_size], state


def rnn_mlp_wrapper_rollout(inputs, state, padded_params, output_size,
                            act="tanh", act_output="identity"):
    """T forward steps fused into ONE pallas_call (inputs: (T, B, din)).

    Weights/biases use constant index_maps, so they are DMA'd into VMEM once
    and stay resident across all T grid steps; only the per-step input/output
    blocks stream.  The module's forward has no recurrence (state is a
    pass-through), so the T axis is "parallel" (shards across v7x's 2 TCs);
    a truly recurrent variant would carry state in VMEM scratch + "arbitrary".
    """
    T, B, din = inputs.shape
    dout_p = padded_params[-1][0].shape[1]
    flat = [p for wb in padded_params for p in wb]

    kernel = functools.partial(_fused_mlp_kernel, n_layers=len(padded_params),
                               act=act, act_output=act_output)

    in_specs = [pl.BlockSpec((None, B, din), lambda t: (t, 0, 0))]
    for p in flat:
        in_specs.append(pl.BlockSpec(p.shape, lambda t: (0, 0)))  # VMEM-resident
    out_spec = pl.BlockSpec((None, B, dout_p), lambda t: (t, 0, 0))

    out_pad = pl.pallas_call(
        kernel,
        out_shape=jax.ShapeDtypeStruct((T, B, dout_p), jnp.float32),
        grid=(T,),
        in_specs=in_specs,
        out_specs=out_spec,
        compiler_params=pltpu.CompilerParams(
            dimension_semantics=("parallel",),
            vmem_limit_bytes=32 * 1024 * 1024),
        cost_estimate=_cost_estimate(padded_params, T, B, act),
    )(inputs, *flat)

    # Single slice for the whole rollout (outside the fused time loop).
    return out_pad[..., :output_size], state


if __name__ == "__main__":
    # Small shapes consistent with the module:
    #   input_size=16, hidden_sizes=[32, 32], output_size=8, batch=8, T=4
    input_size, output_size = 16, 8
    hidden_sizes = [32, 32]
    batch, T = 8, 4

    key = jax.random.PRNGKey(0)
    key, kx, kseq, ks = jax.random.split(key, 4)
    x = jax.random.normal(kx, (batch, input_size), jnp.float32)
    xs = jax.random.normal(kseq, (T, batch, input_size), jnp.float32)
    state = jax.random.normal(ks, (batch, hidden_sizes[0]), jnp.float32)

    params = make_params(key, input_size, output_size, hidden_sizes)
    padded_params = pad_params(params, act="tanh")

    # Single-step forward (module semantics).
    out, state_out = rnn_mlp_wrapper_forward(
        x, state, padded_params, output_size, act="tanh", act_output="identity")
    out = jax.block_until_ready(out)
    state_out = jax.block_until_ready(state_out)

    # T steps fused in one kernel launch (weights stay VMEM-resident).
    outs, state_out2 = rnn_mlp_wrapper_rollout(
        xs, state, padded_params, output_size, act="tanh", act_output="identity")
    outs = jax.block_until_ready(outs)

    # Pure-JAX reference against the unpadded parameters.
    def ref_mlp(z):
        for ln, (w, b) in enumerate(params):
            z = z @ w + b
            if ln < len(params) - 1:
                z = jnp.tanh(z)
        return z

    ref1 = ref_mlp(x)
    refT = jax.vmap(ref_mlp)(xs)

    assert out.shape == (batch, output_size)
    assert outs.shape == (T, batch, output_size)
    assert jnp.allclose(out, ref1, atol=1e-5, rtol=1e-5)
    assert jnp.allclose(outs, refT, atol=1e-5, rtol=1e-5)
    assert jnp.array_equal(state_out, state)
    assert jnp.array_equal(state_out2, state)

    print("KERNEL_OK")
</pallas_src>

<mosaic_0001>
module attributes {stable_mosaic.version = 11 : i64} {
  func.func @_fused_mlp_kernel(%arg0: memref<8x16xf32, #tpu.memory_space<vmem>>, %arg1: memref<16x32xf32, #tpu.memory_space<vmem>>, %arg2: memref<1x32xf32, #tpu.memory_space<vmem>>, %arg3: memref<32x32xf32, #tpu.memory_space<vmem>>, %arg4: memref<1x32xf32, #tpu.memory_space<vmem>>, %arg5: memref<32x128xf32, #tpu.memory_space<vmem>>, %arg6: memref<1x128xf32, #tpu.memory_space<vmem>>, %arg7: memref<8x128xf32, #tpu.memory_space<vmem>>) attributes {dimension_semantics = [], scalar_prefetch = 0 : i64, scratch_operands = 0 : i64, tpu.core_type = #tpu.core_type<tc>} {
    %c0 = arith.constant 0 : index
    %c0_0 = arith.constant 0 : index
    %0 = vector.load %arg0[%c0, %c0_0] : memref<8x16xf32, #tpu.memory_space<vmem>>, vector<8x16xf32>
    %c0_1 = arith.constant 0 : index
    %c0_2 = arith.constant 0 : index
    %1 = vector.load %arg1[%c0_1, %c0_2] : memref<16x32xf32, #tpu.memory_space<vmem>>, vector<16x32xf32>
    %c0_3 = arith.constant 0 : index
    %c0_4 = arith.constant 0 : index
    %2 = vector.load %arg2[%c0_3, %c0_4] : memref<1x32xf32, #tpu.memory_space<vmem>>, vector<1x32xf32>
    %cst = arith.constant dense<0.000000e+00> : vector<8x32xf32>
    %3 = tpu.matmul %0, %1, %cst {dimension_numbers = #tpu.dot_dimension_numbers<[1], [0], [0], [1], [0, 0, 1, 1], [], []>} : vector<8x16xf32>, vector<16x32xf32>, vector<8x32xf32> -> vector<8x32xf32>
    %4 = vector.broadcast %2 : vector<1x32xf32> to vector<8x32xf32>
    %5 = arith.addf %3, %4 : vector<8x32xf32>
    %6 = math.tanh %5 : vector<8x32xf32>
    %c0_5 = arith.constant 0 : index
    %c0_6 = arith.constant 0 : index
    %7 = vector.load %arg3[%c0_5, %c0_6] : memref<32x32xf32, #tpu.memory_space<vmem>>, vector<32x32xf32>
    %c0_7 = arith.constant 0 : index
    %c0_8 = arith.constant 0 : index
    %8 = vector.load %arg4[%c0_7, %c0_8] : memref<1x32xf32, #tpu.memory_space<vmem>>, vector<1x32xf32>
    %cst_9 = arith.constant dense<0.000000e+00> : vector<8x32xf32>
    %9 = tpu.matmul %6, %7, %cst_9 {dimension_numbers = #tpu.dot_dimension_numbers<[1], [0], [0], [1], [0, 0, 1, 1], [], []>} : vector<8x32xf32>, vector<32x32xf32>, vector<8x32xf32> -> vector<8x32xf32>
    %10 = vector.broadcast %8 : vector<1x32xf32> to vector<8x32xf32>
    %11 = arith.addf %9, %10 : vector<8x32xf32>
    %12 = math.tanh %11 : vector<8x32xf32>
    %c0_10 = arith.constant 0 : index
    %c0_11 = arith.constant 0 : index
    %13 = vector.load %arg5[%c0_10, %c0_11] : memref<32x128xf32, #tpu.memory_space<vmem>>, vector<32x128xf32>
    %c0_12 = arith.constant 0 : index
    %c0_13 = arith.constant 0 : index
    %14 = vector.load %arg6[%c0_12, %c0_13] : memref<1x128xf32, #tpu.memory_space<vmem>>, vector<1x128xf32>
    %cst_14 = arith.constant dense<0.000000e+00> : vector<8x128xf32>
    %15 = tpu.matmul %12, %13, %cst_14 {dimension_numbers = #tpu.dot_dimension_numbers<[1], [0], [0], [1], [0, 0, 1, 1], [], []>} : vector<8x32xf32>, vector<32x128xf32>, vector<8x128xf32> -> vector<8x128xf32>
    %16 = vector.broadcast %14 : vector<1x128xf32> to vector<8x128xf32>
    %17 = arith.addf %15, %16 : vector<8x128xf32>
    %c0_15 = arith.constant 0 : index
    %c0_16 = arith.constant 0 : index
    %18 = vector.load %arg7[%c0_15, %c0_16] : memref<8x128xf32, #tpu.memory_space<vmem>>, vector<8x128xf32>
    tpu.vector_store %arg7[%c0_15, %c0_16], %17 {strides = array<i32>} : memref<8x128xf32, #tpu.memory_space<vmem>>, vector<8x128xf32>,
    return
  }
}

</mosaic_0001>

<bundles_post_ra>
// kernel: tpu_custom_call.1
= control target key start
LH: loop header
LB: loop body
LE: loop exit
PB: predicated region body
PF: predicated region fallthrough
CT: control target
= control target key end

     0   :  { %12 = vsyncpa [#allocation3], 0  ;;  %s678_s0 = inlined_call_operand.hbm [shape: f32[8,16], index: 0, kind: input, shape index: {}]   ;;  %s679_s1 = inlined_call_operand.hbm [shape: f32[16,32], index: 1, kind: input, shape index: {}]   ;;  %s680_s2 = inlined_call_operand.vmem [shape: f32[1,32], index: 2, kind: input, shape index: {}]   ;;  %s681_s3 = inlined_call_operand.hbm [shape: f32[32,32], index: 3, kind: input, shape index: {}]   ;;  %s682_s4 = inlined_call_operand.vmem [shape: f32[1,32], index: 4, kind: input, shape index: {}]   ;;  %s683_s5 = inlined_call_operand.hbm [shape: f32[32,128], index: 5, kind: input, shape index: {}]   ;;  %s684_s6 = inlined_call_operand.vmem [shape: f32[1,128], index: 6, kind: input, shape index: {}]   ;;  %s685_s7 = inlined_call_operand.hbm [shape: f32[8,128], index: 7, kind: output, shape index: {}]  }
   0x1   :  { %13 = vsyncpa [#allocation6], 0 }
   0x2   :  { %14 = vsyncpa [#allocation9], 0 }
   0x3   :  { %15 = vsyncpa [#allocation4], 0  ;;  %s548_s24 = smov [#allocation5]   ;;  %s430_s28 = scalar_lea.hbm %s679_s1, 256 }
   0x4   :  { %s31_s25 = sshll.u32 %s548_s24, 4  ;;  %p431_p0 = scmp.ne.s32.totalorder %s679_s1, %s430_s28  ;;  %s32_s25 = int_to_ptr.vmem [resolvable:$true] %s31_s25 }
   0x5   :  { %p434_p1 = scmp.lt.u32.totalorder %s430_s28, %s679_s1 }
   0x7   :  { %p436_p2 = pnand %p434_p1, %p431_p0 }
   0x9   :  { %439 = shalt.err (!%p436_p2)
}
   0xa   :  { %s440_s10 = scalar_lea.vmem %s32_s25, 256  ;;  %p445_p4 = scmp.lt.s32.totalorder %s32_s25, %s32_s25 }
   0xb   :  { %p441_p3 = scmp.ne.s32.totalorder %s32_s25, %s440_s10  ;;  %p446_p5 = scmp.lt.s32.totalorder %s440_s10, %s440_s10 }
   0xd   :  { %p447_p6 = por %p446_p5, %p445_p4 }
   0xf   :  { %p448_p7 = pnand %p447_p6, %p441_p3 }
  0x11   :  { %451 = shalt.err (!%p448_p7)
}
  0x12   :  { %s549_s11 = smov 128   ;;  %s550_s12 = smov 8  }
  0x13   :  { %37 = dma.hbm_to_vmem [thread:$0]  %s679_s1, 256, %s32_s25, [#allocation6], %s549_s11, %s549_s11, %s550_s12  }
  0x14   :  { %s551_s15 = smov [#allocation2]   ;;  %s552_s17 = smov [#allocation7]  }
  0x15   :  { %s22_s16 = sshll.u32 %s551_s15, 4  ;;  %s45_s18 = sshll.u32 %s552_s17, 4  ;;  %s23_s16 = int_to_ptr.vmem [resolvable:$true] %s22_s16  ;;  %s46_s18 = int_to_ptr.vmem [resolvable:$true] %s45_s18 }
  0x16   :  { %s452_s21 = scalar_lea.hbm %s678_s0, 128 }
  0x17   :  { %p453_p8 = scmp.ne.s32.totalorder %s678_s0, %s452_s21  ;;  %p456_p9 = scmp.lt.u32.totalorder %s452_s21, %s678_s0 }
  0x19   :  { %p458_p10 = pnand %p456_p9, %p453_p8 }
  0x1b   :  { %461 = shalt.err (!%p458_p10)
}
  0x1c   :  { %s462_s1 = scalar_lea.vmem %s23_s16, 128  ;;  %p467_p12 = scmp.lt.s32.totalorder %s23_s16, %s23_s16 }
  0x1d   :  { %p463_p11 = scmp.ne.s32.totalorder %s23_s16, %s462_s1  ;;  %p468_p13 = scmp.lt.s32.totalorder %s462_s1, %s462_s1 }
  0x1f   :  { %p469_p0 = por %p468_p13, %p467_p12 }
  0x21   :  { %p470_p1 = pnand %p469_p0, %p463_p11 }
  0x23   :  { %473 = shalt.err (!%p470_p1)
}
  0x24   :  { %25 = dma.hbm_to_vmem [thread:$0]  %s678_s0, 128, %s23_s16, [#allocation3]  }
  0x25   :  { %s474_s30 = scalar_lea.hbm %s681_s3, 512 }
  0x26   :  { %p475_p2 = scmp.ne.s32.totalorder %s681_s3, %s474_s30  ;;  %p478_p3 = scmp.lt.u32.totalorder %s474_s30, %s681_s3 }
  0x28   :  { %p480_p4 = pnand %p478_p3, %p475_p2 }
  0x2a   :  { %483 = shalt.err (!%p480_p4)
}
  0x2b   :  { %s484_s14 = scalar_lea.vmem %s46_s18, 512  ;;  %p489_p6 = scmp.lt.s32.totalorder %s46_s18, %s46_s18 }
  0x2c   :  { %p485_p5 = scmp.ne.s32.totalorder %s46_s18, %s484_s14  ;;  %p490_p7 = scmp.lt.s32.totalorder %s484_s14, %s484_s14 }
  0x2e   :  { %p491_p8 = por %p490_p7, %p489_p6 }
  0x30   :  { %p492_p9 = pnand %p491_p8, %p485_p5 }
  0x32   :  { %495 = shalt.err (!%p492_p9)
}
  0x33   :  { %51 = dma.hbm_to_vmem [thread:$0]  %s681_s3, 512, %s46_s18, [#allocation6], %s549_s11, %s549_s11, %s550_s12  }
  0x34   :  { %s553_s16 = smov [#allocation8]   ;;  %s496_s21 = scalar_lea.hbm %s683_s5, 512 }
  0x35   :  { %s59_s17 = sshll.u32 %s553_s16, 4  ;;  %p497_p10 = scmp.ne.s32.totalorder %s683_s5, %s496_s21  ;;  %s60_s17 = int_to_ptr.vmem [resolvable:$true] %s59_s17 }
  0x36   :  { %p500_p11 = scmp.lt.u32.totalorder %s496_s21, %s683_s5 }
  0x38   :  { %p502_p12 = pnand %p500_p11, %p497_p10 }
  0x3a   :  { %505 = shalt.err (!%p502_p12)
}
  0x3b   :  { %s506_s1 = scalar_lea.vmem %s60_s17, 512  ;;  %p511_p0 = scmp.lt.s32.totalorder %s60_s17, %s60_s17 }
  0x3c   :  { %p507_p13 = scmp.ne.s32.totalorder %s60_s17, %s506_s1  ;;  %p512_p1 = scmp.lt.s32.totalorder %s506_s1, %s506_s1 }
  0x3e   :  { %p513_p2 = por %p512_p1, %p511_p0 }
  0x40   :  { %p514_p3 = pnand %p513_p2, %p507_p13 }
  0x42   :  { %517 = shalt.err (!%p514_p3)
}
  0x43   :  { %65 = dma.hbm_to_vmem [thread:$0]  %s683_s5, 512, %s60_s17, [#allocation9], %s549_s11, %s549_s11, %s550_s12  }
  0x44   :  { %540 = dma.done.wait [#allocation3], 128  }
  0x45   :  { %541 = vsyncadd [#allocation3], 4294967168 }
  0x46   :  { %542 = dma.done.wait [#allocation6], 768  }
  0x47   :  { %543 = vsyncadd [#allocation6], 4294966528 }
  0x48   :  { %544 = dma.done.wait [#allocation9], 512  }
  0x49   :  { %545 = vsyncadd [#allocation9], 4294966784  ;;  %v554_v0 = vmov 0.0|0.0   ;;  %vm555_vm0 = vmmov 0   ;;  %v556_v1 = vmov 0.0   ;;  %v81_v2 = vld [vmem:[#allocation5] sm:$0xff] }
  0x4a   :  { %401 = vmatprep.subr.bf16.mxu0 %v554_v0  ;;  %376 = vmatprep.mubr.msk.f32.mxu0 %vm555_vm0, %v556_v1  ;;  %v82_v3 = vld [vmem:[#allocation5 + $0x8] sm:$0xff]  ;;  %v80_v5 = vld [vmem:[#allocation2] sm:$0xff]  ;;  %vm90_vm1 = vcmask 130048   ;;  %v165_v6 = vld [vmem:[#allocation7] sm:$0xff]  ;;  %vm176_vm2 = vcmask 261120   ;;  %s557_s28 = smov [#allocation10]  }
  0x4b   :  { %404 = vmatprep.subr.bf16.mxu1 %v554_v0  ;;  %387 = vmatprep.mubr.msk.f32.mxu1 %vm555_vm0, %v556_v1  ;;  %v402_v4 = vpack.c.bf16 %v82_v3, %v81_v2  ;;  %v166_v7 = vld [vmem:[#allocation7 + $0x8] sm:$0xff]  ;;  %v167_v8 = vld [vmem:[#allocation7 + $0x10] sm:$0xff]  ;;  %v168_v10 = vld [vmem:[#allocation7 + $0x18] sm:$0xff]  ;;  %s342_s29 = sshll.u32 %s557_s28, 4  ;;  %s343_s29 = int_to_ptr.vmem [resolvable:$true] %s342_s29 }
  0x4c   :  { %v405_v9 = vpack.c.bf16 %v166_v7, %v165_v6  ;;  %v408_v11 = vpack.c.bf16 %v168_v10, %v167_v8  ;;  %v353_v12 = vld [vmem:[%s680_s2] ss:$0 sm:$0xff]  ;;  %v251_v17 = vld [vmem:[#allocation8] sm:$0xff]  ;;  %v253_v19 = vld [vmem:[#allocation8 + $0x10] sm:$0xff]  ;;  %s518_s30 = scalar_lea.vmem %s343_s29, 128  ;;  %p523_p5 = scmp.lt.s32.totalorder %s343_s29, %s343_s29 }
  0x4d   :  { %403 = vmatpush3.bf16.msra.mxu0 %v402_v4  ;;  %v252_v18 = vld [vmem:[#allocation8 + $0x8] sm:$0xff]  ;;  %v254_v21 = vld [vmem:[#allocation8 + $0x18] sm:$0xff]  ;;  %p519_p4 = scmp.ne.s32.totalorder %s343_s29, %s518_s30  ;;  %p524_p6 = scmp.lt.s32.totalorder %s518_s30, %s518_s30 }
  0x4e   :  { %410 = vmatprep.subr.bf16.mxu0 %v554_v0  ;;  %406 = vmatpush3.bf16.msra.mxu1 %v405_v9  ;;  %v411_v20 = vpack.c.bf16 %v252_v18, %v251_v17  ;;  %v414_v22 = vpack.c.bf16 %v254_v21, %v253_v19  ;;  %v355_v23 = vld [vmem:[%s682_s4] ss:$0 sm:$0xff] }
  0x4f   :  { %407 = vmatprep.subr.bf16.mxu1 %v554_v0  ;;  %v357_v28 = vld [vmem:[%s684_s6] ss:$0 sm:$0xff]  ;;  %p525_p7 = por %p524_p6, %p523_p5 }
  0x50   :  { %377 = vmatmul.mubr.msk.f32.vlgmr.msra.gmra.mrb[0].mxu0 %vm90_vm1, %v80_v5 }
  0x51   :  { %398 = vmatprep.mubr.msk.f32.mxu0 %vm555_vm0, %v556_v1  ;;  %412 = vmatpush3.bf16.msra.mxu0 %v411_v20  ;;  %p526_p8 = pnand %p525_p7, %p519_p4 }
  0x52   :  { %409 = vmatpush3.bf16.msra.mxu1 %v408_v11  ;;  %413 = vmatprep.subr.bf16.mxu0 %v554_v0 }
  0x55   :  { %415 = vmatpush3.bf16.msra.mxu0 %v414_v22 }
 0x123   :  { %v160_v13 = vpop.f32.mrb[0].mxu0 }
 0x124   :  { %v161_v14 = vadd.f32 %v353_v12, %v160_v13  ;;  %v378_v15 = vpop.f32.mrb[1].mxu0 }
 0x126   :  { %426 = vtanh.f32 %v161_v14 }
 0x130   :  { %v427_v16 = vpop.eup %426 }
 0x131   :  { %388 = vmatmul.mubr.msk.f32.vlgmr.msra.gmra.mrb[0].mxu1 %vm176_vm2, %v427_v16 }
 0x204   :  { %v246_v24 = vpop.f32.mrb[0].mxu1 }
 0x205   :  { %v247_v25 = vadd.f32 %v355_v23, %v246_v24  ;;  %v389_v26 = vpop.f32.mrb[1].mxu1 }
 0x207   :  { %428 = vtanh.f32 %v247_v25 }
 0x211   :  { %v429_v27 = vpop.eup %428 }
 0x212   :  { %399 = vmatmul.mubr.msk.f32.vlgmr.msra.gmra.mrb[2].mxu0 %vm176_vm2, %v429_v27 }
 0x2e5   :  { %v331_v29 = vpop.f32.mrb[2].mxu0 }
 0x2e6   :  { %v332_v30 = vadd.f32 %v357_v28, %v331_v29  ;;  %v400_v31 = vpop.f32.mrb[3].mxu0 }
 0x2e8   :  { %335 = vst [vmem:[#allocation10] sm:$0xff] %v332_v30 }
 0x2e9   :  { %529 = shalt.err (!%p526_p8)
}
 0x2ea   :  { %s530_s9 = scalar_lea.hbm %s685_s7, 128 }
 0x2eb   :  { %p531_p9 = scmp.ne.s32.totalorder %s685_s7, %s530_s9  ;;  %p534_p10 = scmp.lt.u32.totalorder %s530_s9, %s685_s7 }
 0x2ed   :  { %p536_p11 = pnand %p534_p10, %p531_p9 }
 0x2ef   :  { %539 = shalt.err (!%p536_p11)
}
 0x2f0   :  { %345 = dma.vmem_to_hbm [thread:$0]  %s343_s29, 128, %s685_s7, [#allocation4]  }
 0x2f1   :  { %546 = dma.done.wait [#allocation4], 128  }
 0x2f2   :  { %547 = vsyncadd [#allocation4], 4294967168 }
 0x2f3   :  { %349 = vsyncpa [#allocation3], 1 }
 0x2f4   :  { %350 = vsyncpa [#allocation6], 1 }
 0x2f5   :  { %351 = vsyncpa [#allocation9], 1 }
 0x2f6   :  { %352 = vsyncpa [#allocation4], 1 }

</bundles_post_ra>
